<compile_context>
chip_gen: v7x
topology: tpu7x:2x2x1
jax: 0.10.0
libtpu: 0.0.40
codegen_flags: <defaults>
</compile_context>

<pallas_src>
import jax
import jax.numpy as jnp
from jax.experimental import pallas as pl
from jax.experimental.pallas import tpu as pltpu

# Logical (PyTorch) dims and lane-aligned padded dims.
K = 784                 # input features: kept UNPADDED (full-dim block, 784 % 16 == 0)
H, H_PAD = 200, 256     # hidden features  (2 * 128)
O, O_PAD = 10, 128      # output logits    (1 * 128)

# Largest batch tile: 512 rows is already ~85% of the HBM roofline; bigger
# tiles only amortize the ~0.35us/step grid overhead but can leave a v7x
# TensorCore idle when the grid collapses to a single step.
MAX_BATCH_TILE = 512
_ROW_ALIGN = 16          # bf16 sublane packing: keep batch tiles 16-row aligned


def _round_up(n, m):
    return (n + m - 1) // m * m


def _choose_batch_tile(batch, max_tile=MAX_BATCH_TILE):
    """Batch tile: multiple of 16, >= 2 grid steps whenever the batch allows
    it (dual TensorCore on v7x), minimal padded junk rows, <= max_tile."""
    b16 = _round_up(batch, _ROW_ALIGN)
    if b16 <= 2 * _ROW_ALIGN:                 # too small to split: 1 step
        return b16
    n_steps = max(2, pl.cdiv(b16, max_tile))  # >= 2 steps, tiles on the plateau
    return _round_up(pl.cdiv(b16, n_steps), _ROW_ALIGN)


def mlp_kernel(x_ref, w1_ref, b1_ref, w2_ref, b2_ref, w3_ref, b3_ref, o_ref):
    # x_ref: (TB, 784) bf16 batch tile; weights bf16; biases f32 (added to the
    # f32 MXU accumulator); output stored bf16 as a lane-dense (TB, 128) slab.
    x = x_ref[...]

    # fc1 + ReLU: bf16 MXU matmul, f32 accumulate, ReLU in f32, downcast.
    h1 = jnp.dot(x, w1_ref[...], preferred_element_type=jnp.float32) + b1_ref[...]
    h1 = jnp.maximum(h1, 0.0).astype(jnp.bfloat16)

    # fc2 + ReLU
    h2 = jnp.dot(h1, w2_ref[...], preferred_element_type=jnp.float32) + b2_ref[...]
    h2 = jnp.maximum(h2, 0.0).astype(jnp.bfloat16)

    # fc3 (no activation), lane-dense bf16 store.
    o_ref[...] = (jnp.dot(h2, w3_ref[...], preferred_element_type=jnp.float32)
                  + b3_ref[...]).astype(o_ref.dtype)


def _resident(shape):
    # Constant block index -> stays VMEM-resident across the whole grid;
    # single buffer: no pipelining needed for a block that never changes.
    return pl.BlockSpec(shape, lambda i: (0, 0), pipeline_mode=pl.Buffered(1))


@jax.jit
def mlp_forward(x, padded_params):
    """x: (B, C, H, W) or (B, 784). padded_params from pad_params().
    Returns f32 (B, 10) logits."""
    B = x.shape[0]
    x2d = x.reshape(B, -1)                    # (B, 784) -- no feature-axis pad

    tb = _choose_batch_tile(B)
    b_pad = _round_up(B, tb)
    # Batch pad + bf16 convert fuse into a single pass under this jit.
    x2d = jnp.pad(x2d, ((0, b_pad - B), (0, 0))).astype(jnp.bfloat16)

    w1, b1, w2, b2, w3, b3 = padded_params

    out = pl.pallas_call(
        mlp_kernel,
        out_shape=jax.ShapeDtypeStruct((b_pad, O_PAD), jnp.bfloat16),
        grid=(b_pad // tb,),
        in_specs=[
            # x: one batch tile per grid step (auto double-buffered DMA).
            pl.BlockSpec((tb, K), lambda i: (i, 0)),
            # Weights / biases: VMEM-resident, single-buffered.
            _resident((K, H_PAD)),
            _resident((1, H_PAD)),
            _resident((H_PAD, H_PAD)),
            _resident((1, H_PAD)),
            _resident((H_PAD, O_PAD)),
            _resident((1, O_PAD)),
        ],
        out_specs=pl.BlockSpec((tb, O_PAD), lambda i: (i, 0)),
        compiler_params=pltpu.CompilerParams(
            dimension_semantics=("parallel",),   # shard batch steps across TCs
            vmem_limit_bytes=32 * 1024 * 1024,   # explicit, safe on all gens
        ),
    )(x2d, w1, b1, w2, b2, w3, b3)

    # Drop batch padding + the 118 zero logit lanes; stays lazy under this jit
    # so it fuses with the consumer instead of adding an extra HBM pass.
    return out[:B, :O].astype(jnp.float32)


def init_params(key):
    """PyTorch-shaped init (nn.Linear default bound), stored transposed (in, out)."""
    ks = jax.random.split(key, 6)

    def linear(kw, kb, fan_in, fan_out):
        bound = 1.0 / (fan_in ** 0.5)
        w = jax.random.uniform(kw, (fan_in, fan_out), jnp.float32, -bound, bound)
        b = jax.random.uniform(kb, (1, fan_out), jnp.float32, -bound, bound)
        return w, b

    w1, b1 = linear(ks[0], ks[1], K, H)
    w2, b2 = linear(ks[2], ks[3], H, H)
    w3, b3 = linear(ks[4], ks[5], H, O)
    return (w1, b1, w2, b2, w3, b3)


def pad_params(params):
    """Zero-pad output/hidden dims to lane-aligned widths (exact: zero rows/cols
    contribute 0, ReLU(0)=0).  Weights -> bf16; biases stay f32 (added to the
    f32 accumulator).  w1's input dim stays at its native 784."""
    w1, b1, w2, b2, w3, b3 = params

    def padw(w, rows, cols):
        return jnp.pad(w, ((0, rows - w.shape[0]),
                           (0, cols - w.shape[1]))).astype(jnp.bfloat16)

    def padb(b, cols):
        return jnp.pad(b, ((0, 0), (0, cols - b.shape[1]))).astype(jnp.float32)

    return (padw(w1, K, H_PAD), padb(b1, H_PAD),
            padw(w2, H_PAD, H_PAD), padb(b2, H_PAD),
            padw(w3, H_PAD, O_PAD), padb(b3, O_PAD))


if __name__ == "__main__":
    key = jax.random.PRNGKey(0)
    k_x, k_p = jax.random.split(key)

    # MNIST-like input: batch=2, NCHW (2, 1, 28, 28) -> 784 flattened features.
    x = jax.random.normal(k_x, (2, 1, 28, 28), jnp.float32)
    params = init_params(k_p)
    pparams = pad_params(params)

    out = mlp_forward(x, pparams)
    out = jax.block_until_ready(out)

    # Reference with identical bf16 rounding / f32 accumulation.
    x2d = x.reshape(x.shape[0], -1).astype(jnp.bfloat16)
    w1p, b1p, w2p, b2p, w3p, b3p = pparams
    ref = jnp.maximum(jnp.dot(x2d, w1p, preferred_element_type=jnp.float32) + b1p,
                      0.0).astype(jnp.bfloat16)
    ref = jnp.maximum(jnp.dot(ref, w2p, preferred_element_type=jnp.float32) + b2p,
                      0.0).astype(jnp.bfloat16)
    ref = (jnp.dot(ref, w3p, preferred_element_type=jnp.float32) + b3p)
    ref = ref[:, :O].astype(jnp.bfloat16).astype(jnp.float32)

    assert out.shape == (2, 10)
    assert jnp.allclose(out, ref, atol=1e-2, rtol=1e-2)

    print("KERNEL_OK")
</pallas_src>

<mosaic_0001>
module attributes {stable_mosaic.version = 11 : i64} {
  func.func @mlp_kernel(%arg0: i32, %arg1: memref<16x784xbf16, #tpu.memory_space<vmem>>, %arg2: memref<784x256xbf16, #tpu.memory_space<vmem>>, %arg3: memref<1x256xf32, #tpu.memory_space<vmem>>, %arg4: memref<256x256xbf16, #tpu.memory_space<vmem>>, %arg5: memref<1x256xf32, #tpu.memory_space<vmem>>, %arg6: memref<256x128xbf16, #tpu.memory_space<vmem>>, %arg7: memref<1x128xf32, #tpu.memory_space<vmem>>, %arg8: memref<16x128xbf16, #tpu.memory_space<vmem>>) attributes {dimension_semantics = [#tpu.dimension_semantics<parallel>], iteration_bounds = array<i64: 1>, scalar_prefetch = 0 : i64, scratch_operands = 0 : i64, tpu.core_type = #tpu.core_type<tc>, window_params = [{transform_indices = @transform_0, window_bounds = array<i64: 16, 784>}, {pipeline_mode = #tpu.pipeline_mode<synchronous>, transform_indices = @transform_1, window_bounds = array<i64: 784, 256>}, {pipeline_mode = #tpu.pipeline_mode<synchronous>, transform_indices = @transform_2, window_bounds = array<i64: 1, 256>}, {pipeline_mode = #tpu.pipeline_mode<synchronous>, transform_indices = @transform_3, window_bounds = array<i64: 256, 256>}, {pipeline_mode = #tpu.pipeline_mode<synchronous>, transform_indices = @transform_4, window_bounds = array<i64: 1, 256>}, {pipeline_mode = #tpu.pipeline_mode<synchronous>, transform_indices = @transform_5, window_bounds = array<i64: 256, 128>}, {pipeline_mode = #tpu.pipeline_mode<synchronous>, transform_indices = @transform_6, window_bounds = array<i64: 1, 128>}, {transform_indices = @transform_7, window_bounds = array<i64: 16, 128>}]} {
    %c0 = arith.constant 0 : index
    %c0_0 = arith.constant 0 : index
    %0 = vector.load %arg1[%c0, %c0_0] : memref<16x784xbf16, #tpu.memory_space<vmem>>, vector<16x784xbf16>
    %c0_1 = arith.constant 0 : index
    %c0_2 = arith.constant 0 : index
    %1 = vector.load %arg2[%c0_1, %c0_2] : memref<784x256xbf16, #tpu.memory_space<vmem>>, vector<784x256xbf16>
    %cst = arith.constant dense<0.000000e+00> : vector<16x256xf32>
    %2 = tpu.matmul %0, %1, %cst {dimension_numbers = #tpu.dot_dimension_numbers<[1], [0], [0], [1], [0, 0, 1, 1], [], []>} : vector<16x784xbf16>, vector<784x256xbf16>, vector<16x256xf32> -> vector<16x256xf32>
    %c0_3 = arith.constant 0 : index
    %c0_4 = arith.constant 0 : index
    %3 = vector.load %arg3[%c0_3, %c0_4] : memref<1x256xf32, #tpu.memory_space<vmem>>, vector<1x256xf32>
    %4 = vector.broadcast %3 : vector<1x256xf32> to vector<16x256xf32>
    %5 = arith.addf %2, %4 : vector<16x256xf32>
    %cst_5 = arith.constant 0.000000e+00 : f32
    %6 = vector.broadcast %cst_5 : f32 to vector<16x256xf32>
    %7 = arith.maximumf %5, %6 : vector<16x256xf32>
    %8 = arith.truncf %7 : vector<16x256xf32> to vector<16x256xbf16>
    %c0_6 = arith.constant 0 : index
    %c0_7 = arith.constant 0 : index
    %9 = vector.load %arg4[%c0_6, %c0_7] : memref<256x256xbf16, #tpu.memory_space<vmem>>, vector<256x256xbf16>
    %cst_8 = arith.constant dense<0.000000e+00> : vector<16x256xf32>
    %10 = tpu.matmul %8, %9, %cst_8 {dimension_numbers = #tpu.dot_dimension_numbers<[1], [0], [0], [1], [0, 0, 1, 1], [], []>} : vector<16x256xbf16>, vector<256x256xbf16>, vector<16x256xf32> -> vector<16x256xf32>
    %c0_9 = arith.constant 0 : index
    %c0_10 = arith.constant 0 : index
    %11 = vector.load %arg5[%c0_9, %c0_10] : memref<1x256xf32, #tpu.memory_space<vmem>>, vector<1x256xf32>
    %12 = vector.broadcast %11 : vector<1x256xf32> to vector<16x256xf32>
    %13 = arith.addf %10, %12 : vector<16x256xf32>
    %cst_11 = arith.constant 0.000000e+00 : f32
    %14 = vector.broadcast %cst_11 : f32 to vector<16x256xf32>
    %15 = arith.maximumf %13, %14 : vector<16x256xf32>
    %16 = arith.truncf %15 : vector<16x256xf32> to vector<16x256xbf16>
    %c0_12 = arith.constant 0 : index
    %c0_13 = arith.constant 0 : index
    %17 = vector.load %arg6[%c0_12, %c0_13] : memref<256x128xbf16, #tpu.memory_space<vmem>>, vector<256x128xbf16>
    %cst_14 = arith.constant dense<0.000000e+00> : vector<16x128xf32>
    %18 = tpu.matmul %16, %17, %cst_14 {dimension_numbers = #tpu.dot_dimension_numbers<[1], [0], [0], [1], [0, 0, 1, 1], [], []>} : vector<16x256xbf16>, vector<256x128xbf16>, vector<16x128xf32> -> vector<16x128xf32>
    %c0_15 = arith.constant 0 : index
    %c0_16 = arith.constant 0 : index
    %19 = vector.load %arg7[%c0_15, %c0_16] : memref<1x128xf32, #tpu.memory_space<vmem>>, vector<1x128xf32>
    %20 = vector.broadcast %19 : vector<1x128xf32> to vector<16x128xf32>
    %21 = arith.addf %18, %20 : vector<16x128xf32>
    %22 = arith.truncf %21 : vector<16x128xf32> to vector<16x128xbf16>
    %c0_17 = arith.constant 0 : index
    %c0_18 = arith.constant 0 : index
    %23 = vector.load %arg8[%c0_17, %c0_18] : memref<16x128xbf16, #tpu.memory_space<vmem>>, vector<16x128xbf16>
    tpu.vector_store %arg8[%c0_17, %c0_18], %22 {strides = array<i32>} : memref<16x128xbf16, #tpu.memory_space<vmem>>, vector<16x128xbf16>,
    return
  }
  func.func @transform_0(%arg0: i32) -> (i32, i32) {
    %c0_i32 = arith.constant 0 : i32
    %c0_i32_0 = arith.constant 0 : i32
    return %arg0, %c0_i32 : i32, i32
  }
  func.func @transform_1(%arg0: i32) -> (i32, i32) {
    %c0_i32 = arith.constant 0 : i32
    %c0_i32_0 = arith.constant 0 : i32
    %c0_i32_1 = arith.constant 0 : i32
    return %c0_i32, %c0_i32_0 : i32, i32
  }
  func.func @transform_2(%arg0: i32) -> (i32, i32) {
    %c0_i32 = arith.constant 0 : i32
    %c0_i32_0 = arith.constant 0 : i32
    %c0_i32_1 = arith.constant 0 : i32
    return %c0_i32, %c0_i32_0 : i32, i32
  }
  func.func @transform_3(%arg0: i32) -> (i32, i32) {
    %c0_i32 = arith.constant 0 : i32
    %c0_i32_0 = arith.constant 0 : i32
    %c0_i32_1 = arith.constant 0 : i32
    return %c0_i32, %c0_i32_0 : i32, i32
  }
  func.func @transform_4(%arg0: i32) -> (i32, i32) {
    %c0_i32 = arith.constant 0 : i32
    %c0_i32_0 = arith.constant 0 : i32
    %c0_i32_1 = arith.constant 0 : i32
    return %c0_i32, %c0_i32_0 : i32, i32
  }
  func.func @transform_5(%arg0: i32) -> (i32, i32) {
    %c0_i32 = arith.constant 0 : i32
    %c0_i32_0 = arith.constant 0 : i32
    %c0_i32_1 = arith.constant 0 : i32
    return %c0_i32, %c0_i32_0 : i32, i32
  }
  func.func @transform_6(%arg0: i32) -> (i32, i32) {
    %c0_i32 = arith.constant 0 : i32
    %c0_i32_0 = arith.constant 0 : i32
    %c0_i32_1 = arith.constant 0 : i32
    return %c0_i32, %c0_i32_0 : i32, i32
  }
  func.func @transform_7(%arg0: i32) -> (i32, i32) {
    %c0_i32 = arith.constant 0 : i32
    %c0_i32_0 = arith.constant 0 : i32
    return %arg0, %c0_i32 : i32, i32
  }
}

</mosaic_0001>

<bundles_post_ra>
// kernel: mlp_forward.1
= control target key start
LH: loop header
LB: loop body
LE: loop exit
PB: predicated region body
PF: predicated region fallthrough
CT: control target
= control target key end

     0   :  { %12 = vsyncpa [#allocation3], 0  ;;  %s1951_s0 = inlined_call_operand.vmem [shape: bf16[16,784], index: 0, kind: input, shape index: {}]   ;;  %s1952_s1 = inlined_call_operand.hbm [shape: bf16[784,256], index: 1, kind: input, shape index: {}]   ;;  %s1953_s2 = inlined_call_operand.vmem [shape: f32[1,256], index: 2, kind: input, shape index: {}]   ;;  %s1954_s3 = inlined_call_operand.hbm [shape: bf16[256,256], index: 3, kind: input, shape index: {}]   ;;  %s1955_s4 = inlined_call_operand.vmem [shape: f32[1,256], index: 4, kind: input, shape index: {}]   ;;  %s1956_s5 = inlined_call_operand.vmem [shape: bf16[256,128], index: 5, kind: input, shape index: {}]   ;;  %s1957_s6 = inlined_call_operand.vmem [shape: f32[1,128], index: 6, kind: input, shape index: {}]   ;;  %s1958_s7 = inlined_call_operand.vmem [shape: bf16[16,128], index: 7, kind: output, shape index: {}]  }
   0x1   :  { %13 = vsyncpa [#allocation5], 0  ;;  %s1801_s24 = smov [#allocation2]   ;;  %s1753_s28 = scalar_lea.hbm %s1952_s1, 12544 }
   0x2   :  { %s21_s25 = sshll.u32 %s1801_s24, 4  ;;  %p1754_p0 = scmp.ne.s32.totalorder %s1952_s1, %s1753_s28  ;;  %s22_s25 = int_to_ptr.vmem [resolvable:$true] %s21_s25 }
   0x3   :  { %p1757_p1 = scmp.lt.u32.totalorder %s1753_s28, %s1952_s1 }
   0x5   :  { %p1759_p2 = pnand %p1757_p1, %p1754_p0 }
   0x7   :  { %1762 = shalt.err (!%p1759_p2)
}
   0x8   :  { %s1763_s10 = scalar_lea.vmem %s22_s25, 12544  ;;  %p1768_p4 = scmp.lt.s32.totalorder %s22_s25, %s22_s25 }
   0x9   :  { %p1764_p3 = scmp.ne.s32.totalorder %s22_s25, %s1763_s10  ;;  %p1769_p5 = scmp.lt.s32.totalorder %s1763_s10, %s1763_s10 }
   0xb   :  { %p1770_p6 = por %p1769_p5, %p1768_p4 }
   0xd   :  { %p1771_p7 = pnand %p1770_p6, %p1764_p3 }
   0xf   :  { %1774 = shalt.err (!%p1771_p7)
}
  0x10   :  { %s1802_s11 = smov 128   ;;  %s1803_s12 = smov 8  }
  0x11   :  { %27 = dma.hbm_to_vmem [thread:$0]  %s1952_s1, 12544, %s22_s25, [#allocation3], %s1802_s11, %s1802_s11, %s1803_s12  }
  0x12   :  { %s1804_s15 = smov [#allocation4]   ;;  %s1775_s19 = scalar_lea.hbm %s1954_s3, 4096 }
  0x13   :  { %s35_s16 = sshll.u32 %s1804_s15, 4  ;;  %p1776_p8 = scmp.ne.s32.totalorder %s1954_s3, %s1775_s19  ;;  %s36_s16 = int_to_ptr.vmem [resolvable:$true] %s35_s16 }
  0x14   :  { %p1779_p9 = scmp.lt.u32.totalorder %s1775_s19, %s1954_s3 }
  0x16   :  { %p1781_p10 = pnand %p1779_p9, %p1776_p8 }
  0x18   :  { %1784 = shalt.err (!%p1781_p10)
}
  0x19   :  { %s1785_s24 = scalar_lea.vmem %s36_s16, 4096  ;;  %p1790_p12 = scmp.lt.s32.totalorder %s36_s16, %s36_s16 }
  0x1a   :  { %p1786_p11 = scmp.ne.s32.totalorder %s36_s16, %s1785_s24  ;;  %p1791_p13 = scmp.lt.s32.totalorder %s1785_s24, %s1785_s24 }
  0x1c   :  { %p1792_p0 = por %p1791_p13, %p1790_p12 }
  0x1e   :  { %p1793_p1 = pnand %p1792_p0, %p1786_p11 }
  0x20   :  { %1796 = shalt.err (!%p1793_p1)
}
  0x21   :  { %41 = dma.hbm_to_vmem [thread:$0]  %s1954_s3, 4096, %s36_s16, [#allocation5], %s1802_s11, %s1802_s11, %s1803_s12  }
  0x22   :  { %1797 = dma.done.wait [#allocation3], 12544  }
  0x23   :  { %1798 = vsyncadd [#allocation3], 4294954752 }
  0x24   :  { %1799 = dma.done.wait [#allocation5], 4096  }
  0x25   :  { %1800 = vsyncadd [#allocation5], 4294963200  ;;  %v1532_v0 = vld [vmem:[#allocation2 + $0x104] ss:$8 sps:$4 sm:$0xff]   ;;  %v1534_v1 = vld [vmem:[#allocation2 + $0x100] ss:$8 sps:$4 sm:$0xff]  }
  0x26   :  { %745 = vmatprep.subr.bf16.mxu0 %v1532_v0  ;;  %v1535_v2 = vld [vmem:[#allocation2 + $0x114] ss:$8 sps:$4 sm:$0xff]   ;;  %v1537_v3 = vld [vmem:[#allocation2 + $0x110] ss:$8 sps:$4 sm:$0xff]   ;;  %v1538_v4 = vld [vmem:[#allocation2 + $0x124] ss:$8 sps:$4 sm:$0xff]  }
  0x27   :  { %746 = vmatpush1.bf16.msra.mxu0 %v1534_v1  ;;  %v1540_v5 = vld [vmem:[#allocation2 + $0x120] ss:$8 sps:$4 sm:$0xff]   ;;  %v1541_v6 = vld [vmem:[#allocation2 + $0x134] ss:$8 sps:$4 sm:$0xff]   ;;  %v1543_v7 = vld [vmem:[#allocation2 + $0x130] ss:$8 sps:$4 sm:$0xff]  }
  0x28   :  { %747 = vmatprep.subr.bf16.mxu0 %v1535_v2  ;;  %v1544_v8 = vld [vmem:[#allocation2 + $0x144] ss:$8 sps:$4 sm:$0xff]   ;;  %v1546_v9 = vld [vmem:[#allocation2 + $0x140] ss:$8 sps:$4 sm:$0xff]   ;;  %v1547_v10 = vld [vmem:[#allocation2 + $0x154] ss:$8 sps:$4 sm:$0xff]  }
  0x29   :  { %v1549_v11 = vld [vmem:[#allocation2 + $0x150] ss:$8 sps:$4 sm:$0xff]   ;;  %v1550_v12 = vld [vmem:[#allocation2 + $0x164] ss:$8 sps:$4 sm:$0xff]   ;;  %v1552_v14 = vld [vmem:[#allocation2 + $0x160] ss:$8 sps:$4 sm:$0xff]  }
  0x2a   :  { %v1582_v13 = vld [vmem:[%s1951_s0 + $0xc] ss:$28 sps:$4 sm:$0xff]   ;;  %v1553_v15 = vld [vmem:[#allocation2 + $0x174] ss:$8 sps:$4 sm:$0xff]   ;;  %v1555_v17 = vld [vmem:[#allocation2 + $0x170] ss:$8 sps:$4 sm:$0xff]  }
  0x2b   :  { %748 = vmatpush1.bf16.msra.mxu0 %v1537_v3  ;;  %777 = vmatprep.mubr.bf16.mxu0 %v1582_v13  ;;  %v1589_v16 = vld [vmem:[#allocation2 + $0x4] ss:$8 sps:$4 sm:$0xff]   ;;  %v1594_v19 = vld [vmem:[#allocation2] ss:$8 sps:$4 sm:$0xff]   ;;  %v1595_v20 = vld [vmem:[#allocation2 + $0x14] ss:$8 sps:$4 sm:$0xff]  }
  0x2c   :  { %749 = vmatprep.subr.bf16.mxu0 %v1538_v4  ;;  %v1556_v18 = vld [vmem:[#allocation2 + $0x184] ss:$8 sps:$4 sm:$0xff]   ;;  %702 = vmatprep.subr.bf16.mxu1 %v1589_v16  ;;  %v1558_v21 = vld [vmem:[#allocation2 + $0x180] ss:$8 sps:$4 sm:$0xff]   ;;  %v1600_v22 = vld [vmem:[#allocation2 + $0x10] ss:$8 sps:$4 sm:$0xff]  }
  0x2d   :  { %703 = vmatpush1.bf16.msra.mxu1 %v1594_v19  ;;  %v1601_v23 = vld [vmem:[#allocation2 + $0x24] ss:$8 sps:$4 sm:$0xff]   ;;  %v1559_v24 = vld [vmem:[#allocation2 + $0x194] ss:$8 sps:$4 sm:$0xff]   ;;  %v1606_v25 = vld [vmem:[#allocation2 + $0x20] ss:$8 sps:$4 sm:$0xff]  }
  0x2e   :  { %704 = vmatprep.subr.bf16.mxu1 %v1595_v20  ;;  %v1607_v26 = vld [vmem:[#allocation2 + $0x34] ss:$8 sps:$4 sm:$0xff]   ;;  %v1561_v27 = vld [vmem:[#allocation2 + $0x190] ss:$8 sps:$4 sm:$0xff]   ;;  %v1562_v28 = vld [vmem:[#allocation2 + $0x1a4] ss:$8 sps:$4 sm:$0xff]  }
  0x2f   :  { %750 = vmatpush1.bf16.msra.mxu0 %v1540_v5  ;;  %v1612_v29 = vld [vmem:[#allocation2 + $0x30] ss:$8 sps:$4 sm:$0xff]   ;;  %v1613_v30 = vld [vmem:[#allocation2 + $0x44] ss:$8 sps:$4 sm:$0xff]   ;;  %v1564_v31 = vld [vmem:[#allocation2 + $0x1a0] ss:$8 sps:$4 sm:$0xff]  }
  0x30   :  { %751 = vmatprep.subr.bf16.mxu0 %v1541_v6  ;;  %v1565_v32 = vld [vmem:[#allocation2 + $0x1b4] ss:$8 sps:$4 sm:$0xff]   ;;  %v1618_v33 = vld [vmem:[#allocation2 + $0x40] ss:$8 sps:$4 sm:$0xff]   ;;  %v1567_v35 = vld [vmem:[#allocation2 + $0x1b0] ss:$8 sps:$4 sm:$0xff]  }
  0x31   :  { %705 = vmatpush1.bf16.msra.mxu1 %v1600_v22  ;;  %v1619_v34 = vld [vmem:[#allocation2 + $0x54] ss:$8 sps:$4 sm:$0xff]   ;;  %v1568_v36 = vld [vmem:[#allocation2 + $0x1c4] ss:$8 sps:$4 sm:$0xff]   ;;  %v1624_v37 = vld [vmem:[#allocation2 + $0x50] ss:$8 sps:$4 sm:$0xff]  }
  0x32   :  { %706 = vmatprep.subr.bf16.mxu1 %v1601_v23  ;;  %v1625_v38 = vld [vmem:[#allocation2 + $0x64] ss:$8 sps:$4 sm:$0xff]   ;;  %v1570_v39 = vld [vmem:[#allocation2 + $0x1c0] ss:$8 sps:$4 sm:$0xff]   ;;  %v1571_v40 = vld [vmem:[#allocation2 + $0x1d4] ss:$8 sps:$4 sm:$0xff]  }
  0x33   :  { %752 = vmatpush1.bf16.msra.mxu0 %v1543_v7  ;;  %v1630_v41 = vld [vmem:[#allocation2 + $0x60] ss:$8 sps:$4 sm:$0xff]   ;;  %v1631_v42 = vld [vmem:[#allocation2 + $0x74] ss:$8 sps:$4 sm:$0xff]   ;;  %v1573_v43 = vld [vmem:[#allocation2 + $0x1d0] ss:$8 sps:$4 sm:$0xff]  }
  0x34   :  { %753 = vmatprep.subr.bf16.mxu0 %v1544_v8  ;;  %v1574_v44 = vld [vmem:[#allocation2 + $0x1e4] ss:$8 sps:$4 sm:$0xff]   ;;  %v1636_v45 = vld [vmem:[#allocation2 + $0x70] ss:$8 sps:$4 sm:$0xff]   ;;  %v1576_v47 = vld [vmem:[#allocation2 + $0x1e0] ss:$8 sps:$4 sm:$0xff]  }
  0x35   :  { %707 = vmatpush1.bf16.msra.mxu1 %v1606_v25  ;;  %v1637_v46 = vld [vmem:[#allocation2 + $0x84] ss:$8 sps:$4 sm:$0xff]   ;;  %v1577_v48 = vld [vmem:[#allocation2 + $0x1f4] ss:$8 sps:$4 sm:$0xff]   ;;  %v1642_v49 = vld [vmem:[#allocation2 + $0x80] ss:$8 sps:$4 sm:$0xff]  }
  0x36   :  { %708 = vmatprep.subr.bf16.mxu1 %v1607_v26  ;;  %v1643_v50 = vld [vmem:[#allocation2 + $0x94] ss:$8 sps:$4 sm:$0xff]   ;;  %v1579_v51 = vld [vmem:[#allocation2 + $0x1f0] ss:$8 sps:$4 sm:$0xff]   ;;  %v1585_v52 = vld [vmem:[#allocation2 + $0x204] ss:$8 sps:$4 sm:$0xff]  }
  0x37   :  { %754 = vmatpush1.bf16.msra.mxu0 %v1546_v9  ;;  %v1648_v53 = vld [vmem:[#allocation2 + $0x90] ss:$8 sps:$4 sm:$0xff]   ;;  %v1580_v54 = vld [vmem:[%s1951_s0 + $0x8] ss:$28 sps:$4 sm:$0xff]   ;;  %v1588_v58 = vld [vmem:[#allocation2 + $0x214] ss:$8 sps:$4 sm:$0xff]  }
  0x38   :  { %755 = vmatprep.subr.bf16.mxu0 %v1547_v10  ;;  %v1649_v55 = vld [vmem:[#allocation2 + $0xa4] ss:$8 sps:$4 sm:$0xff]   ;;  %v1583_v56 = vld [vmem:[#allocation2 + $0x200] ss:$8 sps:$4 sm:$0xff]   ;;  %v1675_v57 = vld [vmem:[%s1951_s0 + $0x14] ss:$28 sps:$4 sm:$0xff]  }
  0x39   :  { %709 = vmatpush1.bf16.msra.mxu1 %v1612_v29  ;;  %v1654_v59 = vld [vmem:[#allocation2 + $0xa0] ss:$8 sps:$4 sm:$0xff]   ;;  %v1655_v60 = vld [vmem:[#allocation2 + $0xb4] ss:$8 sps:$4 sm:$0xff]   ;;  %v1586_v61 = vld [vmem:[#allocation2 + $0x210] ss:$8 sps:$4 sm:$0xff]  }
  0x3a   :  { %710 = vmatprep.subr.bf16.mxu1 %v1613_v30  ;;  %v1593_v62 = vld [vmem:[#allocation2 + $0x224] ss:$8 sps:$4 sm:$0xff]   ;;  %v1660_v63 = vld [vmem:[#allocation2 + $0xb0] ss:$8 sps:$4 sm:$0xff]   ;;  %v1591_v2 = vld [vmem:[#allocation2 + $0x220] ss:$8 sps:$4 sm:$0xff]  }
  0x3b   :  { %756 = vmatpush1.bf16.msra.mxu0 %v1549_v11  ;;  %v1687_v0 = vld [vmem:[%s1951_s0 + $0x4] ss:$28 sps:$4 sm:$0xff]   ;;  %v1599_v3 = vld [vmem:[#allocation2 + $0x234] ss:$8 sps:$4 sm:$0xff]   ;;  %v1597_v6 = vld [vmem:[#allocation2 + $0x230] ss:$8 sps:$4 sm:$0xff]  }
  0x3c   :  { %757 = vmatprep.subr.bf16.mxu0 %v1550_v12  ;;  %v1661_v1 = vld [vmem:[#allocation2 + $0xc4] ss:$8 sps:$4 sm:$0xff]   ;;  %734 = vmatprep.mubr.bf16.mxu1 %v1687_v0  ;;  %v1666_v4 = vld [vmem:[#allocation2 + $0xc0] ss:$8 sps:$4 sm:$0xff]   ;;  %v1667_v5 = vld [vmem:[#allocation2 + $0xd4] ss:$8 sps:$4 sm:$0xff]  }
  0x3d   :  { %711 = vmatpush1.bf16.msra.mxu1 %v1618_v33  ;;  %v1605_v7 = vld [vmem:[#allocation2 + $0x244] ss:$8 sps:$4 sm:$0xff]   ;;  %v1672_v8 = vld [vmem:[#allocation2 + $0xd0] ss:$8 sps:$4 sm:$0xff]   ;;  %v1603_v10 = vld [vmem:[#allocation2 + $0x240] ss:$8 sps:$4 sm:$0xff]  }
  0x3e   :  { %712 = vmatprep.subr.bf16.mxu1 %v1619_v34  ;;  %v1676_v9 = vld [vmem:[#allocation2 + $0xe4] ss:$8 sps:$4 sm:$0xff]   ;;  %v1611_v11 = vld [vmem:[#allocation2 + $0x254] ss:$8 sps:$4 sm:$0xff]   ;;  %v1681_v12 = vld [vmem:[#allocation2 + $0xe0] ss:$8 sps:$4 sm:$0xff]  }
  0x3f   :  { %758 = vmatpush1.bf16.msra.mxu0 %v1552_v14  ;;  %v1682_v13 = vld [vmem:[#allocation2 + $0xf4] ss:$8 sps:$4 sm:$0xff]   ;;  %v1609_v14 = vld [vmem:[#allocation2 + $0x250] ss:$8 sps:$4 sm:$0xff]   ;;  %v1615_v16 = vld [vmem:[#allocation2 + $0x260] ss:$8 sps:$4 sm:$0xff]  }
  0x40   :  { %759 = vmatprep.subr.bf16.mxu0 %v1553_v15  ;;  %v1617_v15 = vld [vmem:[#allocation2 + $0x264] ss:$8 sps:$4 sm:$0xff]   ;;  %v1623_v19 = vld [vmem:[#allocation2 + $0x274] ss:$8 sps:$4 sm:$0xff]   ;;  %v1621_v23 = vld [vmem:[#allocation2 + $0x270] ss:$8 sps:$4 sm:$0xff]  }
  0x41   :  { %713 = vmatpush1.bf16.msra.mxu1 %v1624_v37  ;;  %v1685_v20 = vld [vmem:[%s1951_s0] ss:$28 sps:$4 sm:$0xff]   ;;  %v1694_v22 = vld [vmem:[#allocation4 + $0x14] ss:$8 sps:$4 sm:$0xff]   ;;  %v1695_v29 = vld [vmem:[#allocation4 + $0x20] ss:$8 sps:$4 sm:$0xff]  }
  0x42   :  { %714 = vmatprep.subr.bf16.mxu1 %v1625_v38  ;;  %v1692_v25 = vld [vmem:[#allocation4 + $0x10] ss:$8 sps:$4 sm:$0xff]   ;;  %v1697_v26 = vld [vmem:[#allocation4 + $0x24] ss:$8 sps:$4 sm:$0xff]   ;;  %v1700_v30 = vld [vmem:[#allocation4 + $0x34] ss:$8 sps:$4 sm:$0xff]  }
  0x43   :  { %760 = vmatpush1.bf16.msra.mxu0 %v1555_v17  ;;  %v1684_v17 = vld [vmem:[#allocation2 + $0xf0] ss:$8 sps:$4 sm:$0xff]   ;;  %v1698_v33 = vld [vmem:[#allocation4 + $0x30] ss:$8 sps:$4 sm:$0xff]   ;;  %v1703_v34 = vld [vmem:[#allocation4 + $0x44] ss:$8 sps:$4 sm:$0xff]  }
  0x44   :  { %761 = vmatprep.subr.bf16.mxu0 %v1556_v18  ;;  %v1691_v18 = vld [vmem:[#allocation4 + $0x4] ss:$8 sps:$4 sm:$0xff]   ;;  %v1701_v37 = vld [vmem:[#allocation4 + $0x40] ss:$8 sps:$4 sm:$0xff]   ;;  %v1706_v38 = vld [vmem:[#allocation4 + $0x54] ss:$8 sps:$4 sm:$0xff]  }
  0x45   :  { %715 = vmatpush1.bf16.msra.mxu1 %v1630_v41  ;;  %v1704_v41 = vld [vmem:[#allocation4 + $0x50] ss:$8 sps:$4 sm:$0xff]   ;;  %vm698_vm0 = vcmask 130048  }
  0x46   :  { %716 = vmatprep.subr.bf16.mxu1 %v1631_v42  ;;  %v1709_v42 = vld [vmem:[#allocation4 + $0x64] ss:$8 sps:$4 sm:$0xff]   ;;  %v1722_v0 = vld [vmem:[#allocation4 + $0xb0] ss:$8 sps:$4 sm:$0xff]  }
  0x47   :  { %762 = vmatpush1.bf16.msra.mxu0 %v1558_v21  ;;  %v1689_v21 = vld [vmem:[#allocation4] ss:$8 sps:$4 sm:$0xff]  }
  0x48   :  { %763 = vmatprep.subr.bf16.mxu0 %v1559_v24  ;;  %v1629_v24 = vld [vmem:[#allocation2 + $0x284] ss:$8 sps:$4 sm:$0xff]  }
  0x49   :  { %717 = vmatpush1.bf16.msra.mxu1 %v1636_v45  ;;  %v1707_v45 = vld [vmem:[#allocation4 + $0x60] ss:$8 sps:$4 sm:$0xff]  }
  0x4a   :  { %718 = vmatprep.subr.bf16.mxu1 %v1637_v46  ;;  %v1712_v46 = vld [vmem:[#allocation4 + $0x74] ss:$8 sps:$4 sm:$0xff]  }
  0x4b   :  { %764 = vmatpush1.bf16.msra.mxu0 %v1561_v27  ;;  %v1627_v27 = vld [vmem:[#allocation2 + $0x280] ss:$8 sps:$4 sm:$0xff]  }
  0x4c   :  { %765 = vmatprep.subr.bf16.mxu0 %v1562_v28  ;;  %v1635_v28 = vld [vmem:[#allocation2 + $0x294] ss:$8 sps:$4 sm:$0xff]  }
  0x4d   :  { %719 = vmatpush1.bf16.msra.mxu1 %v1642_v49  ;;  %v1710_v49 = vld [vmem:[#allocation4 + $0x70] ss:$8 sps:$4 sm:$0xff]  }
  0x4e   :  { %720 = vmatprep.subr.bf16.mxu1 %v1643_v50  ;;  %v1715_v50 = vld [vmem:[#allocation4 + $0x84] ss:$8 sps:$4 sm:$0xff]  }
  0x4f   :  { %766 = vmatpush1.bf16.msra.mxu0 %v1564_v31  ;;  %v1633_v31 = vld [vmem:[#allocation2 + $0x290] ss:$8 sps:$4 sm:$0xff]  }
  0x50   :  { %767 = vmatprep.subr.bf16.mxu0 %v1565_v32  ;;  %v1641_v32 = vld [vmem:[#allocation2 + $0x2a4] ss:$8 sps:$4 sm:$0xff]  }
  0x51   :  { %721 = vmatpush1.bf16.msra.mxu1 %v1648_v53  ;;  %v1713_v53 = vld [vmem:[#allocation4 + $0x80] ss:$8 sps:$4 sm:$0xff]  }
  0x52   :  { %722 = vmatprep.subr.bf16.mxu1 %v1649_v55  ;;  %v1669_v55 = vld [vmem:[#allocation2 + $0x2f0] ss:$8 sps:$4 sm:$0xff]  }
  0x53   :  { %768 = vmatpush1.bf16.msra.mxu0 %v1567_v35  ;;  %v1639_v35 = vld [vmem:[#allocation2 + $0x2a0] ss:$8 sps:$4 sm:$0xff]  }
  0x54   :  { %769 = vmatprep.subr.bf16.mxu0 %v1568_v36  ;;  %v1647_v36 = vld [vmem:[#allocation2 + $0x2b4] ss:$8 sps:$4 sm:$0xff]  }
  0x55   :  { %723 = vmatpush1.bf16.msra.mxu1 %v1654_v59  ;;  %v1721_v59 = vld [vmem:[#allocation4 + $0xa4] ss:$8 sps:$4 sm:$0xff]  }
  0x56   :  { %724 = vmatprep.subr.bf16.mxu1 %v1655_v60  ;;  %v1678_v60 = vld [vmem:[#allocation2 + $0x300] ss:$8 sps:$4 sm:$0xff]  }
  0x57   :  { %770 = vmatpush1.bf16.msra.mxu0 %v1570_v39  ;;  %v1645_v39 = vld [vmem:[#allocation2 + $0x2b0] ss:$8 sps:$4 sm:$0xff]  }
  0x58   :  { %771 = vmatprep.subr.bf16.mxu0 %v1571_v40  ;;  %v1653_v40 = vld [vmem:[#allocation2 + $0x2c4] ss:$8 sps:$4 sm:$0xff]  }
  0x59   :  { %725 = vmatpush1.bf16.msra.mxu1 %v1660_v63  ;;  %v1805_v63 = vmov 0  }
  0x5a   :  { %726 = vmatprep.subr.bf16.mxu1 %v1661_v1  ;;  %v1727_v1 = vld [vmem:[#allocation4 + $0xc4] ss:$8 sps:$4 sm:$0xff]  }
  0x5b   :  { %772 = vmatpush1.bf16.msra.mxu0 %v1573_v43  ;;  %v1651_v43 = vld [vmem:[#allocation2 + $0x2c0] ss:$8 sps:$4 sm:$0xff]  }
  0x5c   :  { %773 = vmatprep.subr.bf16.mxu0 %v1574_v44  ;;  %v1659_v44 = vld [vmem:[#allocation2 + $0x2d4] ss:$8 sps:$4 sm:$0xff]  }
  0x5d   :  { %727 = vmatpush1.bf16.msra.mxu1 %v1666_v4  ;;  %v1728_v4 = vld [vmem:[#allocation4 + $0xd0] ss:$8 sps:$4 sm:$0xff]  }
  0x5e   :  { %728 = vmatprep.subr.bf16.mxu1 %v1667_v5  ;;  %v1730_v5 = vld [vmem:[#allocation4 + $0xd4] ss:$8 sps:$4 sm:$0xff]  }
  0x5f   :  { %774 = vmatpush1.bf16.msra.mxu0 %v1576_v47  ;;  %v1657_v47 = vld [vmem:[#allocation2 + $0x2d0] ss:$8 sps:$4 sm:$0xff]  }
  0x60   :  { %775 = vmatprep.subr.bf16.mxu0 %v1577_v48  ;;  %v1665_v48 = vld [vmem:[#allocation2 + $0x2e4] ss:$8 sps:$4 sm:$0xff]  }
  0x61   :  { %729 = vmatpush1.bf16.msra.mxu1 %v1672_v8  ;;  %v1736_v8 = vld [vmem:[#allocation4 + $0xf4] ss:$8 sps:$4 sm:$0xff]  }
  0x62   :  { %730 = vmatprep.subr.bf16.mxu1 %v1676_v9  ;;  %v1734_v9 = vld [vmem:[#allocation4 + $0xf0] ss:$8 sps:$4 sm:$0xff]  }
  0x63   :  { %776 = vmatpush1.bf16.msra.mxu0 %v1579_v51  ;;  %v1663_v51 = vld [vmem:[#allocation2 + $0x2e0] ss:$8 sps:$4 sm:$0xff]  }
  0x64   :  { %788 = vmatprep.subr.bf16.mxu0 %v1585_v52  ;;  %v1671_v52 = vld [vmem:[#allocation2 + $0x2f4] ss:$8 sps:$4 sm:$0xff]  }
  0x65   :  { %731 = vmatpush1.bf16.msra.mxu1 %v1681_v12 }
  0x66   :  { %778 = vmatmul.mubr.bf16.vlgmr.msra.gmra.mrb[0].mxu0 %v1580_v54  ;;  %732 = vmatprep.subr.bf16.mxu1 %v1682_v13  ;;  %v1718_v54 = vld [vmem:[#allocation4 + $0x94] ss:$8 sps:$4 sm:$0xff]  }
  0x67   :  { %789 = vmatpush1.bf16.msra.mxu0 %v1583_v56  ;;  %820 = vmatprep.mubr.bf16.mxu0 %v1675_v57  ;;  %v1680_v56 = vld [vmem:[#allocation2 + $0x304] ss:$8 sps:$4 sm:$0xff]   ;;  %v1716_v57 = vld [vmem:[#allocation4 + $0x90] ss:$8 sps:$4 sm:$0xff]  }
  0x68   :  { %790 = vmatprep.subr.bf16.mxu0 %v1588_v58  ;;  %v1673_v58 = vld [vmem:[%s1951_s0 + $0x10] ss:$28 sps:$4 sm:$0xff]  }
  0x69   :  { %733 = vmatpush1.bf16.msra.mxu1 %v1684_v17 }
  0x6a   :  { %1084 = vmatprep.subr.bf16.mxu1 %v1691_v18  ;;  %v161_v18 = vld [vmem:[%s1953_s2] sm:$0x3] }
  0x6b   :  { %791 = vmatpush1.bf16.msra.mxu0 %v1586_v61  ;;  %v1719_v61 = vld [vmem:[#allocation4 + $0xa0] ss:$8 sps:$4 sm:$0xff]  }
  0x6c   :  { %792 = vmatprep.subr.bf16.mxu0 %v1593_v62  ;;  %735 = vmatmul.mubr.bf16.vlgmr.msra.gmra.mrb[0].mxu1 %v1685_v20  ;;  %v1724_v62 = vld [vmem:[#allocation4 + $0xb4] ss:$8 sps:$4 sm:$0xff]  }
  0x6d   :  { %1085 = vmatpush1.bf16.msra.mxu1 %v1689_v21 }
  0x6e   :  { %1086 = vmatprep.subr.bf16.mxu1 %v1694_v22 }
  0x6f   :  { %793 = vmatpush1.bf16.msra.mxu0 %v1591_v2  ;;  %v1725_v2 = vld [vmem:[#allocation4 + $0xc0] ss:$8 sps:$4 sm:$0xff]  }
  0x70   :  { %794 = vmatprep.subr.bf16.mxu0 %v1599_v3  ;;  %v1688_v3 = vld [vmem:[%s1951_s0 + $0x18] ss:$28 sps:$4 sm:$0xff]  }
  0x71   :  { %1087 = vmatpush1.bf16.msra.mxu1 %v1692_v25 }
  0x72   :  { %1088 = vmatprep.subr.bf16.mxu1 %v1697_v26 }
  0x73   :  { %795 = vmatpush1.bf16.msra.mxu0 %v1597_v6  ;;  %v1733_v6 = vld [vmem:[#allocation4 + $0xe4] ss:$8 sps:$4 sm:$0xff]  }
  0x74   :  { %796 = vmatprep.subr.bf16.mxu0 %v1605_v7  ;;  %v1731_v7 = vld [vmem:[#allocation4 + $0xe0] ss:$8 sps:$4 sm:$0xff]  }
  0x75   :  { %1089 = vmatpush1.bf16.msra.mxu1 %v1695_v29 }
  0x76   :  { %1090 = vmatprep.subr.bf16.mxu1 %v1700_v30 }
  0x77   :  { %797 = vmatpush1.bf16.msra.mxu0 %v1603_v10  ;;  %v1737_v10 = vld [vmem:[%s1956_s5 + $0x40] sm:$0xff]  }
  0x78   :  { %798 = vmatprep.subr.bf16.mxu0 %v1611_v11 }
  0x79   :  { %1091 = vmatpush1.bf16.msra.mxu1 %v1698_v33 }
  0x7a   :  { %1092 = vmatprep.subr.bf16.mxu1 %v1703_v34 }
  0x7b   :  { %799 = vmatpush1.bf16.msra.mxu0 %v1609_v14 }
  0x7c   :  { %800 = vmatprep.subr.bf16.mxu0 %v1617_v15  ;;  %v163_v15 = vlaneseq }
  0x7d   :  { %1093 = vmatpush1.bf16.msra.mxu1 %v1701_v37 }
  0x7e   :  { %1094 = vmatprep.subr.bf16.mxu1 %v1706_v38 }
  0x7f   :  { %801 = vmatpush1.bf16.msra.mxu0 %v1615_v16  ;;  %v164_v16 = vshrl.u32 %v163_v15, 7 }
  0x80   :  { %802 = vmatprep.subr.bf16.mxu0 %v1623_v19 }
  0x81   :  { %1095 = vmatpush1.bf16.msra.mxu1 %v1704_v41  ;;  %v165_v17 = vsub.s32 0, %v164_v16  ;;  %v169_v19 = vsub.s32 1, %v164_v16  ;;  %v1739_v41 = vld [vmem:[%s1956_s5 + $0x48] sm:$0xff]  }
  0x82   :  { %1096 = vmatprep.subr.bf16.mxu1 %v1709_v42  ;;  %v1740_v42 = vld [vmem:[%s1956_s5 + $0x8] sm:$0xff]  }
  0x83   :  { %803 = vmatpush1.bf16.msra.mxu0 %v1621_v23  ;;  %v166_v20 = vrot.slane %v161_v18, %v165_v17  ;;  %v170_v21 = vrot.slane %v161_v18, %v169_v19 }
  0x84   :  { %804 = vmatprep.subr.bf16.mxu0 %v1629_v24 }
  0x85   :  { %1097 = vmatpush1.bf16.msra.mxu1 %v1707_v45  ;;  %v1743_v45 = vld [vmem:[%s1956_s5 + $0x58] sm:$0xff]  }
  0x86   :  { %1098 = vmatprep.subr.bf16.mxu1 %v1712_v46  ;;  %v1744_v46 = vld [vmem:[%s1956_s5 + $0x18] sm:$0xff]  }
  0x87   :  { %805 = vmatpush1.bf16.msra.mxu0 %v1627_v27 }
  0x88   :  { %806 = vmatprep.subr.bf16.mxu0 %v1635_v28 }
  0x89   :  { %1099 = vmatpush1.bf16.msra.mxu1 %v1710_v49  ;;  %v1747_v49 = vld [vmem:[%s1956_s5 + $0x68] sm:$0xff]  }
  0x8a   :  { %1100 = vmatprep.subr.bf16.mxu1 %v1715_v50  ;;  %v1748_v50 = vld [vmem:[%s1956_s5 + $0x28] sm:$0xff]  }
  0x8b   :  { %807 = vmatpush1.bf16.msra.mxu0 %v1633_v31 }
  0x8c   :  { %808 = vmatprep.subr.bf16.mxu0 %v1641_v32 }
  0x8d   :  { %1101 = vmatpush1.bf16.msra.mxu1 %v1713_v53  ;;  %v1751_v53 = vld [vmem:[%s1956_s5 + $0x78] sm:$0xff]  }
  0x8e   :  { %1102 = vmatprep.subr.bf16.mxu1 %v1718_v54  ;;  %v1752_v54 = vld [vmem:[%s1956_s5 + $0x38] sm:$0xff]  }
  0x8f   :  { %809 = vmatpush1.bf16.msra.mxu0 %v1639_v35 }
  0x90   :  { %810 = vmatprep.subr.bf16.mxu0 %v1647_v36 }
  0x91   :  { %1103 = vmatpush1.bf16.msra.mxu1 %v1716_v57 }
  0x92   :  { %1104 = vmatprep.subr.bf16.mxu1 %v1721_v59 }
  0x93   :  { %811 = vmatpush1.bf16.msra.mxu0 %v1645_v39 }
  0x94   :  { %812 = vmatprep.subr.bf16.mxu0 %v1653_v40  ;;  %v1738_v40 = vld [vmem:[%s1956_s5] sm:$0xff]  }
  0x95   :  { %1105 = vmatpush1.bf16.msra.mxu1 %v1719_v61 }
  0x96   :  { %1106 = vmatprep.subr.bf16.mxu1 %v1724_v62 }
  0x97   :  { %813 = vmatpush1.bf16.msra.mxu0 %v1651_v43  ;;  %v1741_v43 = vld [vmem:[%s1956_s5 + $0x50] sm:$0xff]  }
  0x98   :  { %814 = vmatprep.subr.bf16.mxu0 %v1659_v44  ;;  %v1742_v44 = vld [vmem:[%s1956_s5 + $0x10] sm:$0xff]  }
  0x99   :  { %1107 = vmatpush1.bf16.msra.mxu1 %v1722_v0 }
  0x9a   :  { %1108 = vmatprep.subr.bf16.mxu1 %v1727_v1 }
  0x9b   :  { %815 = vmatpush1.bf16.msra.mxu0 %v1657_v47  ;;  %v1745_v47 = vld [vmem:[%s1956_s5 + $0x60] sm:$0xff]  }
  0x9c   :  { %816 = vmatprep.subr.bf16.mxu0 %v1665_v48  ;;  %v1746_v48 = vld [vmem:[%s1956_s5 + $0x20] sm:$0xff]  }
  0x9d   :  { %1109 = vmatpush1.bf16.msra.mxu1 %v1725_v2 }
  0x9e   :  { %1110 = vmatprep.subr.bf16.mxu1 %v1730_v5 }
  0x9f   :  { %817 = vmatpush1.bf16.msra.mxu0 %v1663_v51  ;;  %v1749_v51 = vld [vmem:[%s1956_s5 + $0x70] sm:$0xff]  }
  0xa0   :  { %818 = vmatprep.subr.bf16.mxu0 %v1671_v52  ;;  %v1750_v52 = vld [vmem:[%s1956_s5 + $0x30] sm:$0xff]  }
  0xa1   :  { %1111 = vmatpush1.bf16.msra.mxu1 %v1728_v4 }
  0xa2   :  { %1112 = vmatprep.subr.bf16.mxu1 %v1733_v6 }
  0xa3   :  { %819 = vmatpush1.bf16.msra.mxu0 %v1669_v55  ;;  %v912_v55 = vld [vmem:[%s1955_s4] sm:$0x3] }
  0xa4   :  { %831 = vmatprep.subr.bf16.mxu0 %v1680_v56  ;;  %v917_v56 = vrot.slane %v912_v55, %v165_v17  ;;  %v921_v57 = vrot.slane %v912_v55, %v169_v19 }
  0xa5   :  { %1113 = vmatpush1.bf16.msra.mxu1 %v1731_v7 }
  0xa6   :  { %821 = vmatmul.mubr.bf16.vlgmr.msra.gmra.mrb[0].mxu0 %v1673_v58  ;;  %1114 = vmatprep.subr.bf16.mxu1 %v1736_v8 }
  0xa7   :  { %832 = vmatpush1.bf16.msra.mxu0 %v1678_v60  ;;  %863 = vmatprep.mubr.bf16.mxu0 %v1805_v63 }
  0xa9   :  { %1115 = vmatpush1.bf16.msra.mxu1 %v1734_v9 }
  0xaa   :  { %1489 = vmatprep.subr.bf16.mxu1 %v1737_v10 }
  0xb2   :  { %1430 = vmatmul.mubr.msk.bf16.vlgmr.msra.gmra.mrb[0].mxu0 %vm698_vm0, %v1688_v3 }
 0x13f   :  { %v736_v11 = vpop.f32.mrb[0].mxu1 }
 0x140   :  { %v738_v12 = vpop.f32.mrb[1].mxu1  ;;  %v737_v22 = vadd.f32 %v736_v11, %v166_v20 }
 0x141   :  { %v740_v13 = vpop.f32.mrb[2].mxu1  ;;  %v739_v23 = vadd.f32 %v738_v12, %v170_v21  ;;  %v1463_v12 = vld [vmem:[%s1957_s6] ss:$0 sm:$0xff] }
 0x142   :  { %v742_v14 = vpop.f32.mrb[3].mxu1  ;;  %v741_v25 = vadd.f32 %v740_v13, %v166_v20 }
 0x143   :  { %v743_v28 = vadd.f32 %v742_v14, %v170_v21 }
 0x185   :  { %v865_v24 = vpop.f32.mrb[0].mxu0 }
 0x186   :  { %v1512_v26 = vadd.f32 %v865_v24, %v737_v22  ;;  %v867_v27 = vpop.f32.mrb[1].mxu0 }
 0x187   :  { %v1514_v29 = vadd.f32 %v867_v27, %v739_v23  ;;  %v869_v30 = vpop.f32.mrb[2].mxu0 }
 0x188   :  { %v1516_v31 = vadd.f32 %v869_v30, %v741_v25  ;;  %v871_v32 = vpop.f32.mrb[3].mxu0  ;;  %v874_v34 = vmax.f32 %v1512_v26, 0.0 }
 0x189   :  { %v1518_v33 = vadd.f32 %v871_v32, %v743_v28  ;;  %v875_v36 = vmax.f32 %v1514_v29, 0.0 }
 0x18a   :  { %v876_v35 = vmax.f32 %v1516_v31, 0.0 }
 0x18b   :  { %v877_v37 = vmax.f32 %v1518_v33, 0.0 }
 0x18c   :  { %v878_v38 = vpack.c.bf16 %v876_v35, %v874_v34 }
 0x18d   :  { %v879_v39 = vpack.c.bf16 %v877_v37, %v875_v36 }
 0x18f   :  { %1116 = vmatprep.mubr.bf16.mxu1 %v879_v39 }
 0x190   :  { %1117 = vmatmul.mubr.bf16.vlgmr.msra.gmra.mrb[4].mxu1 %v878_v38 }
 0x191   :  { %1490 = vmatpush3.bf16.msra.mxu1 %v1738_v40 }
 0x192   :  { %1491 = vmatprep.subr.bf16.mxu1 %v1739_v41 }
 0x195   :  { %1492 = vmatpush3.bf16.msra.mxu1 %v1740_v42 }
 0x196   :  { %1493 = vmatprep.subr.bf16.mxu1 %v1741_v43 }
 0x199   :  { %1494 = vmatpush3.bf16.msra.mxu1 %v1742_v44 }
 0x19a   :  { %1495 = vmatprep.subr.bf16.mxu1 %v1743_v45 }
 0x19d   :  { %1496 = vmatpush3.bf16.msra.mxu1 %v1744_v46 }
 0x19e   :  { %1497 = vmatprep.subr.bf16.mxu1 %v1745_v47 }
 0x1a1   :  { %1498 = vmatpush3.bf16.msra.mxu1 %v1746_v48 }
 0x1a2   :  { %1499 = vmatprep.subr.bf16.mxu1 %v1747_v49 }
 0x1a5   :  { %1500 = vmatpush3.bf16.msra.mxu1 %v1748_v50 }
 0x1a6   :  { %1501 = vmatprep.subr.bf16.mxu1 %v1749_v51 }
 0x1a9   :  { %1502 = vmatpush3.bf16.msra.mxu1 %v1750_v52 }
 0x1aa   :  { %1503 = vmatprep.subr.bf16.mxu1 %v1751_v53 }
 0x1ad   :  { %1504 = vmatpush3.bf16.msra.mxu1 %v1752_v54 }
 0x263   :  { %v1118_v58 = vpop.f32.mrb[4].mxu1 }
 0x264   :  { %v1119_v59 = vadd.f32 %v1118_v58, %v917_v56  ;;  %v1120_v60 = vpop.f32.mrb[5].mxu1 }
 0x265   :  { %v1121_v61 = vadd.f32 %v1120_v60, %v921_v57  ;;  %v1122_v62 = vpop.f32.mrb[6].mxu1 }
 0x266   :  { %v1123_v63 = vadd.f32 %v1122_v62, %v917_v56  ;;  %v1124_v0 = vpop.f32.mrb[7].mxu1  ;;  %v1127_v2 = vmax.f32 %v1119_v59, 0.0 }
 0x267   :  { %v1125_v1 = vadd.f32 %v1124_v0, %v921_v57  ;;  %v1128_v4 = vmax.f32 %v1121_v61, 0.0 }
 0x268   :  { %v1129_v3 = vmax.f32 %v1123_v63, 0.0 }
 0x269   :  { %v1130_v5 = vmax.f32 %v1125_v1, 0.0 }
 0x26a   :  { %v1131_v6 = vpack.c.bf16 %v1129_v3, %v1127_v2 }
 0x26b   :  { %v1132_v7 = vpack.c.bf16 %v1130_v5, %v1128_v4 }
 0x26d   :  { %1300 = vmatprep.mubr.bf16.mxu1 %v1132_v7 }
 0x26e   :  { %1301 = vmatmul.mubr.bf16.vlgmr.msra.gmra.mrb[8].mxu1 %v1131_v6 }
 0x341   :  { %v1505_v8 = vpop.f32.mrb[8].mxu1 }
 0x342   :  { %v1506_v9 = vpop.f32.mrb[9].mxu1 }
 0x343   :  { %v1507_v10 = vadd.f32 %v1506_v9, %v1505_v8  ;;  %v1508_v11 = vpop.f32.mrb[10].mxu1 }
 0x344   :  { %v1509_v13 = vpop.f32.mrb[11].mxu1 }
 0x345   :  { %v1510_v14 = vadd.f32 %v1509_v13, %v1508_v11  ;;  %v1303_v15 = vadd.f32 %v1507_v10, %v1463_v12 }
 0x347   :  { %v1306_v16 = vadd.f32 %v1510_v14, %v1463_v12 }
 0x349   :  { %v1487_v17 = vpack.c.bf16 %v1306_v16, %v1303_v15 }
 0x34b   :  { %1488 = vst [vmem:[%s1958_s7] sm:$0xff] %v1487_v17  }
 0x34c   :  { %1323 = vsyncpa [#allocation3], 1 }
 0x34d   :  { %1324 = vsyncpa [#allocation5], 1 }

</bundles_post_ra>
